<compile_context>
chip_gen: v7x
topology: tpu7x:2x2x1
jax: 0.10.0
libtpu: 0.0.40
codegen_flags: <defaults>
</compile_context>

<pallas_src>
import functools
import math

import jax
import jax.numpy as jnp
from jax.experimental import pallas as pl
from jax.experimental.pallas import tpu as pltpu


# ------------------------------------------------------------------- kernel
def mhsa_kernel(x_ref, qw_ref, kw_ref, vw_ref, fc_ref, g_ref, b_ref, out_ref,
                *, B, S, H, D_k, D_v):
    x3 = x_ref[...]                                  # (B, S, D)
    D = x3.shape[-1]
    x2 = x3.reshape(B * S, D)                        # leading-dim merge: layout no-op

    inv_temp = 1.0 / (D_k ** 0.5)

    # Projections on the full (B*S, D) slab -- one MXU matmul each.
    qp = jnp.dot(x2, qw_ref[...], preferred_element_type=jnp.float32) * inv_temp
    kp = jnp.dot(x2, kw_ref[...], preferred_element_type=jnp.float32)
    vp = jnp.dot(x2, vw_ref[...], preferred_element_type=jnp.float32)

    qp3 = qp.reshape(B, S, H * D_k)
    kp3 = kp.reshape(B, S, H * D_k)
    vp3 = vp.reshape(B, S, H * D_v)

    # Per-head attention (static unrolled loop over H), batched over B via a
    # single-batch-dim einsum.  The fc projection is folded in per head so no
    # head concatenation / scratch is needed.
    acc = None
    for h in range(H):
        qh = qp3[:, :, h * D_k:(h + 1) * D_k]        # (B, T, D_k), already scaled
        kh = kp3[:, :, h * D_k:(h + 1) * D_k]        # (B, S, D_k)
        vh = vp3[:, :, h * D_v:(h + 1) * D_v]        # (B, S, D_v)

        s = jnp.einsum('btd,bsd->bts', qh, kh,
                       preferred_element_type=jnp.float32)      # (B, T, S)
        s = s - jnp.max(s, axis=-1, keepdims=True)
        e = jnp.exp(s)
        denom = jnp.sum(e, axis=-1, keepdims=True)
        attn = e * pl.reciprocal(denom, approx=True)             # EUP divide

        oh = jnp.einsum('bts,bsd->btd', attn, vh,
                        preferred_element_type=jnp.float32)      # (B, T, D_v)
        oh2 = oh.reshape(B * S, D_v)
        contrib = jnp.dot(oh2, fc_ref[h * D_v:(h + 1) * D_v, :],
                          preferred_element_type=jnp.float32)    # (B*S, D)
        acc = contrib if acc is None else acc + contrib

    # Residual + LayerNorm (eps = 1e-6, matches nn.LayerNorm).
    o = acc + x2
    mu = jnp.mean(o, axis=-1, keepdims=True)
    c = o - mu
    var = jnp.mean(c * c, axis=-1, keepdims=True)
    o = c * jax.lax.rsqrt(var + 1e-6) * g_ref[...] + b_ref[...]

    out_ref[...] = o.reshape(B, S, D).astype(out_ref.dtype)


# ------------------------------------------------------------------ wrapper
def multi_head_self_attention(x, params, *, H, D_k, D_v):
    B, S, D = x.shape
    kernel = functools.partial(mhsa_kernel, B=B, S=S, H=H, D_k=D_k, D_v=D_v)
    return pl.pallas_call(
        kernel,
        out_shape=jax.ShapeDtypeStruct((B, S, D), jnp.float32),
    )(x, params["qw"], params["kw"], params["vw"], params["fc"],
      params["ln_g"], params["ln_b"])


# ---------------------------------------------------------------- reference
def reference(x, params, *, H, D_k, D_v):
    B, S, D = x.shape
    q = (x @ params["qw"]).reshape(B, S, H, D_k).transpose(0, 2, 1, 3)
    k = (x @ params["kw"]).reshape(B, S, H, D_k).transpose(0, 2, 1, 3)
    v = (x @ params["vw"]).reshape(B, S, H, D_v).transpose(0, 2, 1, 3)
    attn = jax.nn.softmax((q / (D_k ** 0.5)) @ jnp.swapaxes(k, -1, -2), axis=-1)
    o = (attn @ v).transpose(0, 2, 1, 3).reshape(B, S, H * D_v)
    o = o @ params["fc"] + x
    mu = o.mean(-1, keepdims=True)
    var = ((o - mu) ** 2).mean(-1, keepdims=True)
    return (o - mu) / jnp.sqrt(var + 1e-6) * params["ln_g"][0] + params["ln_b"][0]


# ------------------------------------------------------------------- main
if __name__ == "__main__":
    B, S = 2, 16
    H, D, D_k, D_v = 2, 32, 16, 16

    key = jax.random.PRNGKey(0)
    ks = jax.random.split(key, 8)

    def unif(k, shape, fan_in):
        bound = math.sqrt(1.0 / fan_in)
        return jax.random.uniform(k, shape, jnp.float32, -bound, bound)

    params = {
        "qw": unif(ks[0], (D, H * D_k), D),
        "kw": unif(ks[1], (D, H * D_k), D),
        "vw": unif(ks[2], (D, H * D_v), D),
        "fc": unif(ks[3], (H * D_v, D), H * D_v),
        "ln_g": jnp.ones((1, D), jnp.float32),
        "ln_b": jnp.zeros((1, D), jnp.float32),
    }
    x = jax.random.normal(ks[4], (B, S, D), jnp.float32)

    out = multi_head_self_attention(x, params, H=H, D_k=D_k, D_v=D_v)
    out = jax.block_until_ready(out)

    ref = reference(x, params, H=H, D_k=D_k, D_v=D_v)
    assert out.shape == (B, S, D)
    # slightly relaxed tolerance: softmax denom uses the EUP approx reciprocal
    assert bool(jnp.allclose(out, ref, atol=2e-3, rtol=2e-3)), "mismatch vs JAX reference"

    print("KERNEL_OK")
</pallas_src>

<mosaic_0001>
module attributes {stable_mosaic.version = 11 : i64} {
  func.func @mhsa_kernel(%arg0: memref<2x16x32xf32, #tpu.memory_space<vmem>>, %arg1: memref<32x32xf32, #tpu.memory_space<vmem>>, %arg2: memref<32x32xf32, #tpu.memory_space<vmem>>, %arg3: memref<32x32xf32, #tpu.memory_space<vmem>>, %arg4: memref<32x32xf32, #tpu.memory_space<vmem>>, %arg5: memref<1x32xf32, #tpu.memory_space<vmem>>, %arg6: memref<1x32xf32, #tpu.memory_space<vmem>>, %arg7: memref<2x16x32xf32, #tpu.memory_space<vmem>>) attributes {dimension_semantics = [], scalar_prefetch = 0 : i64, scratch_operands = 0 : i64, tpu.core_type = #tpu.core_type<tc>} {
    %c0 = arith.constant 0 : index
    %c0_0 = arith.constant 0 : index
    %c0_1 = arith.constant 0 : index
    %0 = vector.load %arg0[%c0, %c0_0, %c0_1] : memref<2x16x32xf32, #tpu.memory_space<vmem>>, vector<2x16x32xf32>
    %1 = vector.shape_cast %0 : vector<2x16x32xf32> to vector<32x32xf32>
    %c0_2 = arith.constant 0 : index
    %c0_3 = arith.constant 0 : index
    %2 = vector.load %arg1[%c0_2, %c0_3] : memref<32x32xf32, #tpu.memory_space<vmem>>, vector<32x32xf32>
    %cst = arith.constant dense<0.000000e+00> : vector<32x32xf32>
    %3 = tpu.matmul %1, %2, %cst {dimension_numbers = #tpu.dot_dimension_numbers<[1], [0], [0], [1], [0, 0, 1, 1], [], []>} : vector<32x32xf32>, vector<32x32xf32>, vector<32x32xf32> -> vector<32x32xf32>
    %cst_4 = arith.constant 2.500000e-01 : f32
    %4 = vector.broadcast %cst_4 : f32 to vector<32x32xf32>
    %5 = arith.mulf %3, %4 : vector<32x32xf32>
    %c0_5 = arith.constant 0 : index
    %c0_6 = arith.constant 0 : index
    %6 = vector.load %arg2[%c0_5, %c0_6] : memref<32x32xf32, #tpu.memory_space<vmem>>, vector<32x32xf32>
    %cst_7 = arith.constant dense<0.000000e+00> : vector<32x32xf32>
    %7 = tpu.matmul %1, %6, %cst_7 {dimension_numbers = #tpu.dot_dimension_numbers<[1], [0], [0], [1], [0, 0, 1, 1], [], []>} : vector<32x32xf32>, vector<32x32xf32>, vector<32x32xf32> -> vector<32x32xf32>
    %c0_8 = arith.constant 0 : index
    %c0_9 = arith.constant 0 : index
    %8 = vector.load %arg3[%c0_8, %c0_9] : memref<32x32xf32, #tpu.memory_space<vmem>>, vector<32x32xf32>
    %cst_10 = arith.constant dense<0.000000e+00> : vector<32x32xf32>
    %9 = tpu.matmul %1, %8, %cst_10 {dimension_numbers = #tpu.dot_dimension_numbers<[1], [0], [0], [1], [0, 0, 1, 1], [], []>} : vector<32x32xf32>, vector<32x32xf32>, vector<32x32xf32> -> vector<32x32xf32>
    %10 = vector.shape_cast %5 : vector<32x32xf32> to vector<2x16x32xf32>
    %11 = vector.shape_cast %7 : vector<32x32xf32> to vector<2x16x32xf32>
    %12 = vector.shape_cast %9 : vector<32x32xf32> to vector<2x16x32xf32>
    %13 = vector.extract_strided_slice %10 {offsets = [0, 0, 0], sizes = [2, 16, 16], strides = [1, 1, 1]} : vector<2x16x32xf32> to vector<2x16x16xf32>
    %14 = vector.extract_strided_slice %11 {offsets = [0, 0, 0], sizes = [2, 16, 16], strides = [1, 1, 1]} : vector<2x16x32xf32> to vector<2x16x16xf32>
    %15 = vector.extract_strided_slice %12 {offsets = [0, 0, 0], sizes = [2, 16, 16], strides = [1, 1, 1]} : vector<2x16x32xf32> to vector<2x16x16xf32>
    "tpu.trace_start"() <{level = 10 : i32, message = "btd,bsd->bts"}> : () -> ()
    %cst_11 = arith.constant dense<0.000000e+00> : vector<2x16x16xf32>
    %16 = tpu.matmul %13, %14, %cst_11 {dimension_numbers = #tpu.dot_dimension_numbers<[2], [2], [1], [1], [0, 0, 0, 1, 1, 1], [0], [0]>} : vector<2x16x16xf32>, vector<2x16x16xf32>, vector<2x16x16xf32> -> vector<2x16x16xf32>
    "tpu.trace_stop"() : () -> ()
    %cst_12 = arith.constant dense<0xFF800000> : vector<2x16xf32>
    %17 = vector.multi_reduction <maximumf>, %16, %cst_12 [2] : vector<2x16x16xf32> to vector<2x16xf32>
    %18 = vector.shape_cast %17 : vector<2x16xf32> to vector<2x16x1xf32>
    %19 = vector.broadcast %18 : vector<2x16x1xf32> to vector<2x16x16xf32>
    %20 = arith.subf %16, %19 : vector<2x16x16xf32>
    %21 = math.exp %20 : vector<2x16x16xf32>
    %cst_13 = arith.constant dense<0.000000e+00> : vector<2x16xf32>
    %22 = vector.multi_reduction <add>, %21, %cst_13 [2] : vector<2x16x16xf32> to vector<2x16xf32>
    %23 = vector.shape_cast %22 : vector<2x16xf32> to vector<2x16x1xf32>
    %24 = tpu.reciprocal %23 {approx = true} : vector<2x16x1xf32> -> vector<2x16x1xf32>
    %25 = vector.broadcast %24 : vector<2x16x1xf32> to vector<2x16x16xf32>
    %26 = arith.mulf %21, %25 : vector<2x16x16xf32>
    "tpu.trace_start"() <{level = 10 : i32, message = "bts,bsd->btd"}> : () -> ()
    %cst_14 = arith.constant dense<0.000000e+00> : vector<2x16x16xf32>
    %27 = tpu.matmul %26, %15, %cst_14 {dimension_numbers = #tpu.dot_dimension_numbers<[2], [1], [1], [2], [0, 0, 0, 1, 1, 2], [0], [0]>} : vector<2x16x16xf32>, vector<2x16x16xf32>, vector<2x16x16xf32> -> vector<2x16x16xf32>
    "tpu.trace_stop"() : () -> ()
    %28 = vector.shape_cast %27 : vector<2x16x16xf32> to vector<32x16xf32>
    %c0_15 = arith.constant 0 : index
    %c0_16 = arith.constant 0 : index
    %29 = vector.load %arg4[%c0_15, %c0_16] : memref<32x32xf32, #tpu.memory_space<vmem>>, vector<16x32xf32>
    %cst_17 = arith.constant dense<0.000000e+00> : vector<32x32xf32>
    %30 = tpu.matmul %28, %29, %cst_17 {dimension_numbers = #tpu.dot_dimension_numbers<[1], [0], [0], [1], [0, 0, 1, 1], [], []>} : vector<32x16xf32>, vector<16x32xf32>, vector<32x32xf32> -> vector<32x32xf32>
    %31 = vector.extract_strided_slice %10 {offsets = [0, 0, 16], sizes = [2, 16, 16], strides = [1, 1, 1]} : vector<2x16x32xf32> to vector<2x16x16xf32>
    %32 = vector.extract_strided_slice %11 {offsets = [0, 0, 16], sizes = [2, 16, 16], strides = [1, 1, 1]} : vector<2x16x32xf32> to vector<2x16x16xf32>
    %33 = vector.extract_strided_slice %12 {offsets = [0, 0, 16], sizes = [2, 16, 16], strides = [1, 1, 1]} : vector<2x16x32xf32> to vector<2x16x16xf32>
    "tpu.trace_start"() <{level = 10 : i32, message = "btd,bsd->bts"}> : () -> ()
    %cst_18 = arith.constant dense<0.000000e+00> : vector<2x16x16xf32>
    %34 = tpu.matmul %31, %32, %cst_18 {dimension_numbers = #tpu.dot_dimension_numbers<[2], [2], [1], [1], [0, 0, 0, 1, 1, 1], [0], [0]>} : vector<2x16x16xf32>, vector<2x16x16xf32>, vector<2x16x16xf32> -> vector<2x16x16xf32>
    "tpu.trace_stop"() : () -> ()
    %cst_19 = arith.constant dense<0xFF800000> : vector<2x16xf32>
    %35 = vector.multi_reduction <maximumf>, %34, %cst_19 [2] : vector<2x16x16xf32> to vector<2x16xf32>
    %36 = vector.shape_cast %35 : vector<2x16xf32> to vector<2x16x1xf32>
    %37 = vector.broadcast %36 : vector<2x16x1xf32> to vector<2x16x16xf32>
    %38 = arith.subf %34, %37 : vector<2x16x16xf32>
    %39 = math.exp %38 : vector<2x16x16xf32>
    %cst_20 = arith.constant dense<0.000000e+00> : vector<2x16xf32>
    %40 = vector.multi_reduction <add>, %39, %cst_20 [2] : vector<2x16x16xf32> to vector<2x16xf32>
    %41 = vector.shape_cast %40 : vector<2x16xf32> to vector<2x16x1xf32>
    %42 = tpu.reciprocal %41 {approx = true} : vector<2x16x1xf32> -> vector<2x16x1xf32>
    %43 = vector.broadcast %42 : vector<2x16x1xf32> to vector<2x16x16xf32>
    %44 = arith.mulf %39, %43 : vector<2x16x16xf32>
    "tpu.trace_start"() <{level = 10 : i32, message = "bts,bsd->btd"}> : () -> ()
    %cst_21 = arith.constant dense<0.000000e+00> : vector<2x16x16xf32>
    %45 = tpu.matmul %44, %33, %cst_21 {dimension_numbers = #tpu.dot_dimension_numbers<[2], [1], [1], [2], [0, 0, 0, 1, 1, 2], [0], [0]>} : vector<2x16x16xf32>, vector<2x16x16xf32>, vector<2x16x16xf32> -> vector<2x16x16xf32>
    "tpu.trace_stop"() : () -> ()
    %46 = vector.shape_cast %45 : vector<2x16x16xf32> to vector<32x16xf32>
    %c16 = arith.constant 16 : index
    %c0_22 = arith.constant 0 : index
    %47 = vector.load %arg4[%c16, %c0_22] : memref<32x32xf32, #tpu.memory_space<vmem>>, vector<16x32xf32>
    %cst_23 = arith.constant dense<0.000000e+00> : vector<32x32xf32>
    %48 = tpu.matmul %46, %47, %cst_23 {dimension_numbers = #tpu.dot_dimension_numbers<[1], [0], [0], [1], [0, 0, 1, 1], [], []>} : vector<32x16xf32>, vector<16x32xf32>, vector<32x32xf32> -> vector<32x32xf32>
    %49 = arith.addf %30, %48 : vector<32x32xf32>
    %50 = arith.addf %49, %1 : vector<32x32xf32>
    %cst_24 = arith.constant dense<0.000000e+00> : vector<32xf32>
    %51 = vector.multi_reduction <add>, %50, %cst_24 [1] : vector<32x32xf32> to vector<32xf32>
    %52 = vector.shape_cast %51 : vector<32xf32> to vector<32x1xf32>
    %cst_25 = arith.constant 3.200000e+01 : f32
    %53 = vector.broadcast %cst_25 : f32 to vector<32x1xf32>
    %54 = arith.divf %52, %53 : vector<32x1xf32>
    %55 = vector.broadcast %54 : vector<32x1xf32> to vector<32x32xf32>
    %56 = arith.subf %50, %55 : vector<32x32xf32>
    %57 = arith.mulf %56, %56 : vector<32x32xf32>
    %cst_26 = arith.constant dense<0.000000e+00> : vector<32xf32>
    %58 = vector.multi_reduction <add>, %57, %cst_26 [1] : vector<32x32xf32> to vector<32xf32>
    %59 = vector.shape_cast %58 : vector<32xf32> to vector<32x1xf32>
    %cst_27 = arith.constant 3.200000e+01 : f32
    %60 = vector.broadcast %cst_27 : f32 to vector<32x1xf32>
    %61 = arith.divf %59, %60 : vector<32x1xf32>
    %cst_28 = arith.constant 9.99999997E-7 : f32
    %62 = vector.broadcast %cst_28 : f32 to vector<32x1xf32>
    %63 = arith.addf %61, %62 : vector<32x1xf32>
    %64 = math.rsqrt %63 : vector<32x1xf32>
    %65 = vector.broadcast %64 : vector<32x1xf32> to vector<32x32xf32>
    %66 = arith.mulf %56, %65 : vector<32x32xf32>
    %c0_29 = arith.constant 0 : index
    %c0_30 = arith.constant 0 : index
    %67 = vector.load %arg5[%c0_29, %c0_30] : memref<1x32xf32, #tpu.memory_space<vmem>>, vector<1x32xf32>
    %68 = vector.broadcast %67 : vector<1x32xf32> to vector<32x32xf32>
    %69 = arith.mulf %66, %68 : vector<32x32xf32>
    %c0_31 = arith.constant 0 : index
    %c0_32 = arith.constant 0 : index
    %70 = vector.load %arg6[%c0_31, %c0_32] : memref<1x32xf32, #tpu.memory_space<vmem>>, vector<1x32xf32>
    %71 = vector.broadcast %70 : vector<1x32xf32> to vector<32x32xf32>
    %72 = arith.addf %69, %71 : vector<32x32xf32>
    %73 = vector.shape_cast %72 : vector<32x32xf32> to vector<2x16x32xf32>
    %c0_33 = arith.constant 0 : index
    %c0_34 = arith.constant 0 : index
    %c0_35 = arith.constant 0 : index
    %74 = vector.load %arg7[%c0_33, %c0_34, %c0_35] : memref<2x16x32xf32, #tpu.memory_space<vmem>>, vector<2x16x32xf32>
    tpu.vector_store %arg7[%c0_33, %c0_34, %c0_35], %73 {strides = array<i32>} : memref<2x16x32xf32, #tpu.memory_space<vmem>>, vector<2x16x32xf32>,
    return
  }
}

</mosaic_0001>

<bundles_post_ra>
// kernel: tpu_custom_call.1
= control target key start
LH: loop header
LB: loop body
LE: loop exit
PB: predicated region body
PF: predicated region fallthrough
CT: control target
= control target key end

     0   :  { %12 = vsyncpa [#allocation3], 0  ;;  %s2323_s0 = inlined_call_operand.hbm [shape: f32[2,16,32], index: 0, kind: input, shape index: {}]   ;;  %s2324_s1 = inlined_call_operand.hbm [shape: f32[32,32], index: 1, kind: input, shape index: {}]   ;;  %s2325_s2 = inlined_call_operand.hbm [shape: f32[32,32], index: 2, kind: input, shape index: {}]   ;;  %s2326_s3 = inlined_call_operand.hbm [shape: f32[32,32], index: 3, kind: input, shape index: {}]   ;;  %s2327_s4 = inlined_call_operand.hbm [shape: f32[32,32], index: 4, kind: input, shape index: {}]   ;;  %s2328_s5 = inlined_call_operand.vmem [shape: f32[1,32], index: 5, kind: input, shape index: {}]   ;;  %s2329_s6 = inlined_call_operand.vmem [shape: f32[1,32], index: 6, kind: input, shape index: {}]   ;;  %s2330_s7 = inlined_call_operand.hbm [shape: f32[2,16,32], index: 7, kind: output, shape index: {}]  }
   0x1   :  { %13 = vsyncpa [#allocation6], 0 }
   0x2   :  { %14 = vsyncpa [#allocation9], 0 }
   0x3   :  { %15 = vsyncpa [#allocation4], 0  ;;  %s1985_s24 = smov [#allocation5]   ;;  %s1986_s26 = smov [#allocation8]  }
   0x4   :  { %s33_s25 = sshll.u32 %s1985_s24, 4  ;;  %s57_s27 = sshll.u32 %s1986_s26, 4  ;;  %s34_s25 = int_to_ptr.vmem [resolvable:$true] %s33_s25  ;;  %s2034_s27 = int_to_ptr.vmem [resolvable:$true] %s57_s27 }
   0x5   :  { %s1845_s30 = scalar_lea.hbm %s2324_s1, 512 }
   0x6   :  { %p1846_p0 = scmp.ne.s32.totalorder %s2324_s1, %s1845_s30  ;;  %p1849_p1 = scmp.lt.u32.totalorder %s1845_s30, %s2324_s1 }
   0x8   :  { %p1851_p2 = pnand %p1849_p1, %p1846_p0 }
   0xa   :  { %1854 = shalt.err (!%p1851_p2)
}
   0xb   :  { %s1855_s12 = scalar_lea.vmem %s34_s25, 512  ;;  %p1860_p4 = scmp.lt.s32.totalorder %s34_s25, %s34_s25 }
   0xc   :  { %p1856_p3 = scmp.ne.s32.totalorder %s34_s25, %s1855_s12  ;;  %p1861_p5 = scmp.lt.s32.totalorder %s1855_s12, %s1855_s12 }
   0xe   :  { %p1862_p6 = por %p1861_p5, %p1860_p4 }
  0x10   :  { %p1863_p7 = pnand %p1862_p6, %p1856_p3 }
  0x12   :  { %1866 = shalt.err (!%p1863_p7)
}
  0x13   :  { %s1987_s13 = smov 128   ;;  %s1988_s14 = smov 8  }
  0x14   :  { %39 = dma.hbm_to_vmem [thread:$0]  %s2324_s1, 512, %s34_s25, [#allocation6], %s1987_s13, %s1987_s13, %s1988_s14  }
  0x15   :  { %s1867_s19 = scalar_lea.hbm %s2326_s3, 512 }
  0x16   :  { %p1868_p8 = scmp.ne.s32.totalorder %s2326_s3, %s1867_s19  ;;  %p1871_p9 = scmp.lt.u32.totalorder %s1867_s19, %s2326_s3 }
  0x18   :  { %p1873_p10 = pnand %p1871_p9, %p1868_p8 }
  0x1a   :  { %1876 = shalt.err (!%p1873_p10)
}
  0x1b   :  { %s1877_s24 = scalar_lea.vmem %s2034_s27, 512  ;;  %p1882_p12 = scmp.lt.s32.totalorder %s2034_s27, %s2034_s27 }
  0x1c   :  { %p1878_p11 = scmp.ne.s32.totalorder %s2034_s27, %s1877_s24  ;;  %p1883_p13 = scmp.lt.s32.totalorder %s1877_s24, %s1877_s24 }
  0x1e   :  { %p1884_p0 = por %p1883_p13, %p1882_p12 }
  0x20   :  { %p1885_p1 = pnand %p1884_p0, %p1878_p11 }
  0x22   :  { %1888 = shalt.err (!%p1885_p1)
}
  0x23   :  { %63 = dma.hbm_to_vmem [thread:$0]  %s2326_s3, 512, %s2034_s27, [#allocation9], %s1987_s13, %s1987_s13, %s1988_s14  }
  0x24   :  { %s1989_s26 = smov [#allocation2]   ;;  %s1990_s29 = smov [#allocation7]  }
  0x25   :  { %s21_s28 = sshll.u32 %s1989_s26, 4  ;;  %s45_s30 = sshll.u32 %s1990_s29, 4  ;;  %s22_s28 = int_to_ptr.vmem [resolvable:$true] %s21_s28  ;;  %s2071_s30 = int_to_ptr.vmem [resolvable:$true] %s45_s30 }
  0x26   :  { %s1889_s10 = scalar_lea.hbm %s2323_s0, 512 }
  0x27   :  { %p1890_p2 = scmp.ne.s32.totalorder %s2323_s0, %s1889_s10  ;;  %p1893_p3 = scmp.lt.u32.totalorder %s1889_s10, %s2323_s0 }
  0x29   :  { %p1895_p4 = pnand %p1893_p3, %p1890_p2 }
  0x2b   :  { %1898 = shalt.err (!%p1895_p4)
}
  0x2c   :  { %s1899_s3 = scalar_lea.vmem %s22_s28, 512  ;;  %p1904_p6 = scmp.lt.s32.totalorder %s22_s28, %s22_s28 }
  0x2d   :  { %p1900_p5 = scmp.ne.s32.totalorder %s22_s28, %s1899_s3  ;;  %p1905_p7 = scmp.lt.s32.totalorder %s1899_s3, %s1899_s3 }
  0x2f   :  { %p1906_p8 = por %p1905_p7, %p1904_p6 }
  0x31   :  { %p1907_p9 = pnand %p1906_p8, %p1900_p5 }
  0x33   :  { %1910 = shalt.err (!%p1907_p9)
}
  0x34   :  { %27 = dma.hbm_to_vmem [thread:$0]  %s2323_s0, 512, %s22_s28, [#allocation3], %s1987_s13, %s1987_s13, %s1988_s14  }
  0x35   :  { %s1911_s20 = scalar_lea.hbm %s2325_s2, 512 }
  0x36   :  { %p1912_p10 = scmp.ne.s32.totalorder %s2325_s2, %s1911_s20  ;;  %p1915_p11 = scmp.lt.u32.totalorder %s1911_s20, %s2325_s2 }
  0x38   :  { %p1917_p12 = pnand %p1915_p11, %p1912_p10 }
  0x3a   :  { %1920 = shalt.err (!%p1917_p12)
}
  0x3b   :  { %s1921_s1 = scalar_lea.vmem %s2071_s30, 512  ;;  %p1926_p0 = scmp.lt.s32.totalorder %s2071_s30, %s2071_s30 }
  0x3c   :  { %p1922_p13 = scmp.ne.s32.totalorder %s2071_s30, %s1921_s1  ;;  %p1927_p1 = scmp.lt.s32.totalorder %s1921_s1, %s1921_s1 }
  0x3e   :  { %p1928_p2 = por %p1927_p1, %p1926_p0 }
  0x40   :  { %p1929_p3 = pnand %p1928_p2, %p1922_p13 }
  0x42   :  { %1932 = shalt.err (!%p1929_p3)
}
  0x43   :  { %51 = dma.hbm_to_vmem [thread:$0]  %s2325_s2, 512, %s2071_s30, [#allocation6], %s1987_s13, %s1987_s13, %s1988_s14  }
  0x44   :  { %s1991_s26 = smov [#allocation10]   ;;  %s1933_s9 = scalar_lea.hbm %s2327_s4, 512 }
  0x45   :  { %s69_s28 = sshll.u32 %s1991_s26, 4  ;;  %p1934_p4 = scmp.ne.s32.totalorder %s2327_s4, %s1933_s9  ;;  %s70_s28 = int_to_ptr.vmem [resolvable:$true] %s69_s28 }
  0x46   :  { %p1937_p5 = scmp.lt.u32.totalorder %s1933_s9, %s2327_s4 }
  0x48   :  { %p1939_p6 = pnand %p1937_p5, %p1934_p4 }
  0x4a   :  { %1942 = shalt.err (!%p1939_p6)
}
  0x4b   :  { %s1943_s16 = scalar_lea.vmem %s70_s28, 512  ;;  %p1948_p8 = scmp.lt.s32.totalorder %s70_s28, %s70_s28 }
  0x4c   :  { %p1944_p7 = scmp.ne.s32.totalorder %s70_s28, %s1943_s16  ;;  %p1949_p9 = scmp.lt.s32.totalorder %s1943_s16, %s1943_s16 }
  0x4e   :  { %p1950_p10 = por %p1949_p9, %p1948_p8 }
  0x50   :  { %p1951_p11 = pnand %p1950_p10, %p1944_p7 }
  0x52   :  { %1954 = shalt.err (!%p1951_p11)
}
  0x53   :  { %75 = dma.hbm_to_vmem [thread:$0]  %s2327_s4, 512, %s70_s28, [#allocation9], %s1987_s13, %s1987_s13, %s1988_s14  }
  0x54   :  { %1977 = dma.done.wait [#allocation3], 512  }
  0x55   :  { %1978 = vsyncadd [#allocation3], 4294966784 }
  0x56   :  { %1979 = dma.done.wait [#allocation6], 1024  }
  0x57   :  { %1980 = vsyncadd [#allocation6], 4294966272 }
  0x58   :  { %1981 = dma.done.wait [#allocation9], 1024  }
  0x59   :  { %1982 = vsyncadd [#allocation9], 4294966272  ;;  %vm103_vm0 = vcmask 261120   ;;  %v99_v0 = vld [vmem:[#allocation5] sm:$0xff]  ;;  %v100_v1 = vld [vmem:[#allocation5 + $0x8] sm:$0xff]  ;;  %vm383_vm1 = vcmask 130048  }
  0x5a   :  { %v101_v2 = vld [vmem:[#allocation5 + $0x10] sm:$0xff]  ;;  %v1700_v3 = vpack.c.bf16 %v100_v1, %v99_v0  ;;  %v102_v4 = vld [vmem:[#allocation5 + $0x18] sm:$0xff]  ;;  %v2123_v5 = vld [vmem:[#allocation2] sm:$0xff]  ;;  %s1992_s4 = smov 112  }
  0x5b   :  { %v1704_v6 = vpack.c.bf16 %v102_v4, %v101_v2  ;;  %1590 = vmatprep.mubr.msk.f32.mxu1 %vm103_vm0, %v2123_v5  ;;  %v205_v7 = vld [vmem:[#allocation7] sm:$0xff]  ;;  %v206_v8 = vld [vmem:[#allocation7 + $0x8] sm:$0xff]  ;;  %1618 = vmatprep.mubr.msk.f32.mxu0 %vm103_vm0, %v2123_v5  ;;  %v296_v11 = vld [vmem:[#allocation8 + $0x10] sm:$0xff] }
  0x5c   :  { %1701 = vmatprep.subr.bf16.mxu1 %v1700_v3  ;;  %v294_v9 = vld [vmem:[#allocation8] sm:$0xff]  ;;  %v295_v10 = vld [vmem:[#allocation8 + $0x8] sm:$0xff]  ;;  %v1708_v12 = vpack.c.bf16 %v206_v8, %v205_v7  ;;  %v297_v14 = vld [vmem:[#allocation8 + $0x18] sm:$0xff] }
  0x5d   :  { %1703 = vmatpush3.bf16.msra.mxu1 %v1700_v3  ;;  %v1716_v13 = vpack.c.bf16 %v295_v10, %v294_v9  ;;  %v207_v15 = vld [vmem:[#allocation7 + $0x10] sm:$0xff]  ;;  %v208_v16 = vld [vmem:[#allocation7 + $0x18] sm:$0xff]  ;;  %v1720_v17 = vpack.c.bf16 %v297_v14, %v296_v11  ;;  %v2129_v18 = vld [vmem:[#allocation2 + $0x8] sm:$0xff] }
  0x5e   :  { %1705 = vmatprep.subr.bf16.mxu1 %v1704_v6  ;;  %v2131_v19 = vld [vmem:[#allocation2 + $0x10] sm:$0xff]  ;;  %v1712_v20 = vpack.c.bf16 %v208_v16, %v207_v15  ;;  %v2137_v21 = vld [vmem:[#allocation2 + $0x18] sm:$0xff]  ;;  %vm2171_vm2 = vmpackc.low %vm383_vm1, %vm383_vm1 }
  0x5f   :  { %1717 = vmatprep.subr.bf16.mxu0 %v1716_v13 }
  0x60   :  { %1719 = vmatpush3.bf16.msra.mxu0 %v1716_v13 }
  0x61   :  { %1707 = vmatpush3.bf16.msra.mxu1 %v1704_v6  ;;  %1721 = vmatprep.subr.bf16.mxu0 %v1720_v17 }
  0x62   :  { %1709 = vmatprep.subr.bf16.mxu1 %v1708_v12 }
  0x64   :  { %1591 = vmatmul.mubr.msk.f32.vlgmr.msra.gmra.mrb[0].mxu1 %vm103_vm0, %v2129_v18  ;;  %1723 = vmatpush3.bf16.msra.mxu0 %v1720_v17 }
  0x65   :  { %1711 = vmatpush3.bf16.msra.mxu1 %v1708_v12  ;;  %1593 = vmatprep.mubr.msk.f32.mxu1 %vm103_vm0, %v2131_v19 }
  0x66   :  { %1713 = vmatprep.subr.bf16.mxu1 %v1712_v20 }
  0x67   :  { %1619 = vmatmul.mubr.msk.f32.vlgmr.msra.gmra.mrb[0].mxu0 %vm103_vm0, %v2129_v18 }
  0x68   :  { %1594 = vmatmul.mubr.msk.f32.gmra.mrb[2].mxu1 %vm103_vm0, %v2137_v21  ;;  %1621 = vmatprep.mubr.msk.f32.mxu0 %vm103_vm0, %v2131_v19 }
  0x69   :  { %1715 = vmatpush3.bf16.msra.mxu1 %v1712_v20  ;;  %1604 = vmatprep.mubr.msk.f32.mxu1 %vm103_vm0, %v2123_v5 }
  0x6b   :  { %1622 = vmatmul.mubr.msk.f32.gmra.mrb[2].mxu0 %vm103_vm0, %v2137_v21 }
  0x6c   :  { %1605 = vmatmul.mubr.msk.f32.vlgmr.msra.gmra.mrb[4].mxu1 %vm103_vm0, %v2129_v18 }
  0x6d   :  { %1607 = vmatprep.mubr.msk.f32.mxu1 %vm103_vm0, %v2131_v19 }
  0x70   :  { %1608 = vmatmul.mubr.msk.f32.gmra.mrb[6].mxu1 %vm103_vm0, %v2137_v21 }
 0x137   :  { %v1592_v22 = vpop.f32.mrb[0].mxu1 }
 0x138   :  { %v182_v23 = vpop.f32.mrb[1].mxu1  ;;  %v202_v38 = vmul.f32 0.25, %v1592_v22 }
 0x139   :  { %v2155_v24 = vmul.f32 0.25, %v182_v23 }
 0x13a   :  { %v2161_v28 = vpop.f32.mrb[0].mxu0 }
 0x13b   :  { %v1595_v25 = vpop.f32.mrb[2].mxu1  ;;  %1628 = vmatprep.mubr.msk.f32.mxu1 %vm383_vm1, %v2155_v24  ;;  %v2193_v40 = vpop.f32.mrb[1].mxu0 }
 0x13c   :  { %v192_v26 = vpop.f32.mrb[3].mxu1  ;;  %v204_v39 = vmul.f32 0.25, %v1595_v25  ;;  %v1795_v41 = vpack.i.bf16 %v2161_v28, %v2193_v40  ;;  %v1736_v42 = vpack.c.bf16 %v2161_v28, %v2193_v40 }
 0x13d   :  { %v2159_v27 = vmul.f32 0.25, %v192_v26 }
 0x13e   :  { %v2199_v43 = vpop.f32.mrb[2].mxu0 }
 0x13f   :  { %v2163_v29 = vpop.f32.mrb[4].mxu1  ;;  %1635 = vmatprep.mubr.msk.f32.mxu0 %vm383_vm1, %v2159_v27  ;;  %v2201_v44 = vpop.f32.mrb[3].mxu0 }
 0x140   :  { %v2167_v30 = vpop.f32.mrb[5].mxu1  ;;  %v1800_v45 = vpack.i.bf16 %v2199_v43, %v2201_v44  ;;  %v2207_v46 = vpack.c.bf16 %v2199_v43, %v2201_v44  ;;  %v1171_v43 = vld [vmem:[#allocation10 + $0x18] sm:$0xff] }
 0x141   :  { %v1785_v32 = vpack.i.bf16 %v2163_v29, %v2167_v30  ;;  %v1724_v33 = vpack.c.bf16 %v2163_v29, %v2167_v30 }
 0x143   :  { %v2179_v34 = vpop.f32.mrb[6].mxu1  ;;  %1726 = vmatprep.subr.msk.bf16.mxu1 %vm2171_vm2, %v1724_v33 }
 0x144   :  { %v285_v35 = vpop.f32.mrb[7].mxu1  ;;  %1729 = vmatpush3.bf16.xpose.msk.msra.mxu1 %vm2171_vm2, %v1724_v33 }
 0x145   :  { %v1790_v36 = vpack.i.bf16 %v2179_v34, %v285_v35  ;;  %v1730_v37 = vpack.c.bf16 %v2179_v34, %v285_v35  ;;  %1737 = vmatprep.subr.bf16.mxu1 %v1736_v42 }
 0x147   :  { %1732 = vmatprep.subr.msk.bf16.mxu0 %vm2171_vm2, %v1730_v37 }
 0x148   :  { %1735 = vmatpush3.bf16.xpose.msk.msra.mxu0 %vm2171_vm2, %v1730_v37 }
 0x14b   :  { %1629 = vmatmul.mubr.msk.f32.vlgmr.msra.gmra.mrb[8].mxu1 %vm383_vm1, %v202_v38 }
 0x14c   :  { %1739 = vmatpush3.bf16.msra.mxu1 %v1736_v42 }
 0x14d   :  { %1741 = vmatprep.subr.bf16.mxu1 %v2207_v46 }
 0x14f   :  { %1636 = vmatmul.mubr.msk.f32.vlgmr.msra.gmra.mrb[4].mxu0 %vm383_vm1, %v204_v39 }
 0x21e   :  { %v1630_v47 = vpop.f32.mrb[8].mxu1 }
 0x21f   :  { %v462_v48 = vpop.f32.mrb[9].mxu1  ;;  %v561_v52 = vsel %vm383_vm1, %v1630_v47, -inf }
 0x220   :  { %v558_v49 = vsel %vm383_vm1, %v462_v48, -inf }
 0x221   :  { %559 = vmax.xlane.f32.xlu0 %v558_v49 }
 0x222   :  { %v1637_v50 = vpop.f32.mrb[4].mxu0 }
 0x223   :  { %v549_v51 = vpop.f32.mrb[5].mxu0  ;;  %v567_v54 = vsel %vm383_vm1, %v1637_v50, -inf }
 0x224   :  { %v564_v53 = vsel %vm383_vm1, %v549_v51, -inf }
 0x225   :  { %562 = vmax.xlane.f32.xlu0 %v561_v52  ;;  %565 = vmax.xlane.f32.xlu1 %v564_v53 }
 0x229   :  { %568 = vmax.xlane.f32.xlu1 %v567_v54 }
 0x2ae   :  { %v560_v55 = vpop.xlane.xlu0 %559 }
 0x2af   :  { %v570_v56 = vsub.f32 %v462_v48, %v560_v55 }
 0x2b1   :  { %v574_v57 = vmul.f32 1.442695, %v570_v56 }
 0x2b2   :  { %v563_v58 = vpop.xlane.xlu0 %562  ;;  %v566_v59 = vpop.xlane.xlu1 %565 }
 0x2b3   :  { %1805 = vpow2.f32 %v574_v57  ;;  %v571_v60 = vsub.f32 %v1630_v47, %v563_v58  ;;  %v572_v61 = vsub.f32 %v549_v51, %v566_v59 }
 0x2b5   :  { %v576_v62 = vmul.f32 1.442695, %v571_v60  ;;  %v578_v63 = vmul.f32 1.442695, %v572_v61 }
 0x2b6   :  { %v569_v0 = vpop.xlane.xlu1 %568 }
 0x2b7   :  { %1807 = vpow2.f32 %v576_v62  ;;  %v573_v1 = vsub.f32 %v1637_v50, %v569_v0 }
 0x2b8   :  { %1809 = vpow2.f32 %v578_v63 }
 0x2b9   :  { %v580_v2 = vmul.f32 1.442695, %v573_v1 }
 0x2bb   :  { %1811 = vpow2.f32 %v580_v2 }
 0x2bd   :  { %v1806_v3 = vpop.eup %1805 }
 0x2be   :  { %v582_v4 = vsel %vm383_vm1, %v1806_v3, 0.0 }
 0x2bf   :  { %583 = vadd.xlane.f32.xlu0 %v582_v4 }
 0x2c1   :  { %v1808_v6 = vpop.eup %1807 }
 0x2c2   :  { %v1810_v7 = vpop.eup %1809  ;;  %v585_v8 = vsel %vm383_vm1, %v1808_v6, 0.0 }
 0x2c3   :  { %586 = vadd.xlane.f32.xlu1 %v585_v8  ;;  %v588_v9 = vsel %vm383_vm1, %v1810_v7, 0.0 }
 0x2c4   :  { %589 = vadd.xlane.f32.xlu0 %v588_v9 }
 0x2c5   :  { %v1812_v10 = vpop.eup %1811 }
 0x2c6   :  { %v591_v11 = vsel %vm383_vm1, %v1812_v10, 0.0 }
 0x2c7   :  { %592 = vadd.xlane.f32.xlu1 %v591_v11 }
 0x2d8   :  { %1791 = vrot.lane.b32.xlu1 %v1790_v36, %s1992_s4 }
 0x2da   :  { %1786 = vrot.lane.b32.xlu0 %v1785_v32, %s1992_s4 }
 0x2dc   :  { %766 = vrot.lane.b32.xlu1 %v2155_v24, %s1992_s4 }
 0x2de   :  { %857 = vrot.lane.b32.xlu0 %v2159_v27, %s1992_s4 }
 0x2e0   :  { %768 = vrot.lane.b32.xlu1 %v202_v38, %s1992_s4 }
 0x2e4   :  { %859 = vrot.lane.b32.xlu1 %v204_v39, %s1992_s4 }
 0x34c   :  { %v584_v12 = vpop.xlane.xlu0 %583 }
 0x34d   :  { %1813 = vrcp.f32 %v584_v12 }
 0x350   :  { %v587_v13 = vpop.xlane.xlu1 %586 }
 0x351   :  { %v590_v14 = vpop.xlane.xlu0 %589  ;;  %1815 = vrcp.f32 %v587_v13 }
 0x352   :  { %1817 = vrcp.f32 %v590_v14 }
 0x354   :  { %v593_v15 = vpop.xlane.xlu1 %592 }
 0x355   :  { %v1787_v16 = vpop.permute.xlu0 %1786  ;;  %1819 = vrcp.f32 %v593_v15 }
 0x356   :  { %v1789_v17 = vunpack.i.h.bf16 %v1787_v16  ;;  %v1788_v20 = vunpack.i.l.bf16 %v1787_v16 }
 0x357   :  { %v1814_v22 = vpop.eup %1813 }
 0x358   :  { %v1744_v23 = vpack.c.bf16 %v1789_v17, %v1788_v20  ;;  %v1792_v24 = vpop.permute.xlu1 %1791  ;;  %v598_v25 = vmul.f32 %v1814_v22, %v1806_v3 }
 0x359   :  { %v1794_v26 = vunpack.i.h.bf16 %v1792_v24  ;;  %v1793_v27 = vunpack.i.l.bf16 %v1792_v24  ;;  %v858_v39 = vpop.permute.xlu0 %857  ;;  %v1170_v24 = vld [vmem:[#allocation10 + $0x10] sm:$0xff] }
 0x35a   :  { %1746 = vmatprep.subr.msk.bf16.mxu0 %vm2171_vm2, %v1744_v23  ;;  %1642 = vmatprep.mubr.msk.f32.mxu1 %vm383_vm1, %v598_v25  ;;  %v1764_v28 = vpack.c.bf16 %v1171_v43, %v1170_v24 }
 0x35b   :  { %v1816_v29 = vpop.eup %1815  ;;  %1749 = vmatpush3.bf16.xpose.msk.msra.mxu0 %vm2171_vm2, %v1744_v23  ;;  %v1750_v35 = vpack.c.bf16 %v1794_v26, %v1793_v27 }
 0x35c   :  { %v1818_v30 = vpop.eup %1817  ;;  %v599_v32 = vmul.f32 %v1816_v29, %v1808_v6  ;;  %v767_v33 = vpop.permute.xlu1 %766 }
 0x35d   :  { %1656 = vmatprep.mubr.msk.f32.mxu0 %vm383_vm1, %v767_v33  ;;  %v600_v34 = vmul.f32 %v1818_v30, %v1810_v7 }
 0x35e   :  { %1643 = vmatmul.mubr.msk.f32.vlgmr.msra.gmra.mrb[10].mxu1 %vm383_vm1, %v599_v32 }
 0x35f   :  { %v1820_v36 = vpop.eup %1819  ;;  %1743 = vmatpush3.bf16.msra.mxu1 %v2207_v46  ;;  %1649 = vmatprep.mubr.msk.f32.mxu1 %vm383_vm1, %v600_v34 }
 0x360   :  { %v601_v37 = vmul.f32 %v1820_v36, %v1812_v10  ;;  %1752 = vmatprep.subr.msk.bf16.mxu1 %vm2171_vm2, %v1750_v35  ;;  %v769_v38 = vpop.permute.xlu1 %768  ;;  %v764_v36 = vld [vmem:[#allocation10] sm:$0xff] }
 0x362   :  { %1657 = vmatmul.mubr.msk.f32.vlgmr.msra.gmra.mrb[6].mxu0 %vm383_vm1, %v769_v38  ;;  %1650 = vmatmul.mubr.msk.f32.vlgmr.msra.gmra.mrb[12].mxu1 %vm383_vm1, %v601_v37  ;;  %v765_v37 = vld [vmem:[#allocation10 + $0x8] sm:$0xff] }
 0x363   :  { %1663 = vmatprep.mubr.msk.f32.mxu1 %vm383_vm1, %v858_v39  ;;  %v1768_v38 = vpack.c.bf16 %v765_v37, %v764_v36 }
 0x364   :  { %v860_v42 = vpop.permute.xlu1 %859 }
 0x368   :  { %1755 = vmatpush3.bf16.xpose.msk.msra.mxu1 %vm2171_vm2, %v1750_v35 }
 0x36f   :  { %1664 = vmatmul.mubr.msk.f32.vlgmr.msra.gmra.mrb[14].mxu1 %vm383_vm1, %v860_v42 }
 0x431   :  { %v2246_v46 = vpop.f32.mrb[10].mxu1 }
 0x432   :  { %v2248_v47 = vpop.f32.mrb[11].mxu1 }
 0x435   :  { %v1658_v48 = vpop.f32.mrb[6].mxu0  ;;  %v2250_v49 = vpop.f32.mrb[12].mxu1 }
 0x436   :  { %v848_v50 = vpop.f32.mrb[7].mxu0  ;;  %v2252_v51 = vpop.f32.mrb[13].mxu1  ;;  %v951_v52 = vsel %vm383_vm1, %v1658_v48, -inf }
 0x437   :  { %952 = vmax.xlane.f32.xlu1 %v951_v52  ;;  %v948_v53 = vsel %vm383_vm1, %v848_v50, -inf }
 0x438   :  { %949 = vmax.xlane.f32.xlu0 %v948_v53 }
 0x442   :  { %v1665_v31 = vpop.f32.mrb[14].mxu1 }
 0x443   :  { %v939_v54 = vpop.f32.mrb[15].mxu1  ;;  %v957_v56 = vsel %vm383_vm1, %v1665_v31, -inf }
 0x444   :  { %v954_v55 = vsel %vm383_vm1, %v939_v54, -inf }
 0x445   :  { %955 = vmax.xlane.f32.xlu0 %v954_v55 }
 0x449   :  { %958 = vmax.xlane.f32.xlu0 %v957_v56 }
 0x4c4   :  { %v953_v57 = vpop.xlane.xlu1 %952 }
 0x4c5   :  { %v961_v58 = vsub.f32 %v1658_v48, %v953_v57  ;;  %v950_v59 = vpop.xlane.xlu0 %949 }
 0x4c6   :  { %v960_v60 = vsub.f32 %v848_v50, %v950_v59 }
 0x4c7   :  { %v966_v61 = vmul.f32 1.442695, %v961_v58 }
 0x4c8   :  { %v964_v62 = vmul.f32 1.442695, %v960_v60 }
 0x4c9   :  { %1821 = vpow2.f32 %v966_v61 }
 0x4ca   :  { %1823 = vpow2.f32 %v964_v62 }
 0x4d2   :  { %v956_v63 = vpop.xlane.xlu0 %955 }
 0x4d3   :  { %v1822_v0 = vpop.eup %1821  ;;  %v962_v1 = vsub.f32 %v939_v54, %v956_v63 }
 0x4d4   :  { %v1824_v2 = vpop.eup %1823  ;;  %v975_v3 = vsel %vm383_vm1, %v1822_v0, 0.0 }
 0x4d5   :  { %v968_v4 = vmul.f32 1.442695, %v962_v1  ;;  %976 = vadd.xlane.f32.xlu1 %v975_v3  ;;  %v972_v6 = vsel %vm383_vm1, %v1824_v2, 0.0 }
 0x4d6   :  { %973 = vadd.xlane.f32.xlu0 %v972_v6  ;;  %v959_v7 = vpop.xlane.xlu0 %958 }
 0x4d7   :  { %1825 = vpow2.f32 %v968_v4  ;;  %v963_v8 = vsub.f32 %v1665_v31, %v959_v7 }
 0x4d9   :  { %v970_v9 = vmul.f32 1.442695, %v963_v8 }
 0x4db   :  { %1827 = vpow2.f32 %v970_v9 }
 0x4e1   :  { %v1826_v10 = vpop.eup %1825 }
 0x4e2   :  { %v978_v11 = vsel %vm383_vm1, %v1826_v10, 0.0 }
 0x4e3   :  { %979 = vadd.xlane.f32.xlu0 %v978_v11 }
 0x4e5   :  { %v1828_v12 = vpop.eup %1827 }
 0x4e6   :  { %v981_v13 = vsel %vm383_vm1, %v1828_v12, 0.0 }
 0x4e7   :  { %982 = vadd.xlane.f32.xlu1 %v981_v13 }
 0x4f8   :  { %1801 = vrot.lane.b32.xlu1 %v1800_v45, %s1992_s4 }
 0x4f9   :  { %1796 = vrot.lane.b32.xlu0 %v1795_v41, %s1992_s4 }
 0x562   :  { %v977_v15 = vpop.xlane.xlu1 %976 }
 0x563   :  { %v974_v14 = vpop.xlane.xlu0 %973 }
 0x564   :  { %1829 = vrcp.f32 %v974_v14 }
 0x565   :  { %1831 = vrcp.f32 %v977_v15 }
 0x56e   :  { %v1830_v16 = vpop.eup %1829 }
 0x56f   :  { %v988_v17 = vmul.f32 %v1830_v16, %v1824_v2  ;;  %v1832_v40 = vpop.eup %1831 }
 0x570   :  { %v980_v20 = vpop.xlane.xlu0 %979  ;;  %v989_v30 = vmul.f32 %v1832_v40, %v1822_v0 }
 0x571   :  { %1833 = vrcp.f32 %v980_v20  ;;  %1670 = vmatprep.mubr.msk.f32.mxu0 %vm383_vm1, %v988_v17 }
 0x574   :  { %v983_v22 = vpop.xlane.xlu1 %982  ;;  %v1797_v23 = vpop.permute.xlu0 %1796 }
 0x575   :  { %1835 = vrcp.f32 %v983_v22  ;;  %v1799_v44 = vunpack.i.h.bf16 %v1797_v23  ;;  %v1798_v45 = vunpack.i.l.bf16 %v1797_v23 }
 0x577   :  { %v1756_v25 = vpack.c.bf16 %v1799_v44, %v1798_v45 }
 0x578   :  { %v1802_v41 = vpop.permute.xlu1 %1801 }
 0x579   :  { %v1804_v26 = vunpack.i.h.bf16 %v1802_v41  ;;  %v1803_v27 = vunpack.i.l.bf16 %v1802_v41  ;;  %1757 = vmatprep.subr.bf16.mxu0 %v1756_v25 }
 0x57a   :  { %1759 = vmatpush3.bf16.msra.mxu0 %v1756_v25  ;;  %v1512_v25 = vld [vmem:[%s2328_s5] ss:$0 sm:$0xff]  ;;  %s1993_s5 = smov [#allocation11]  }
 0x57b   :  { %v1834_v29 = vpop.eup %1833  ;;  %v1760_v32 = vpack.c.bf16 %v1804_v26, %v1803_v27  ;;  %1765 = vmatprep.subr.bf16.mxu0 %v1764_v28  ;;  %v1513_v26 = vld [vmem:[%s2329_s6] ss:$0 sm:$0xff]  ;;  %s1454_s19 = sshll.u32 %s1993_s5, 4  ;;  %s1455_s19 = int_to_ptr.vmem [resolvable:$true] %s1454_s19 }
 0x57c   :  { %v990_v33 = vmul.f32 %v1834_v29, %v1826_v10  ;;  %s1955_s6 = scalar_lea.vmem %s1455_s19, 512  ;;  %p1960_p13 = scmp.lt.s32.totalorder %s1455_s19, %s1455_s19 }
 0x57d   :  { %1671 = vmatmul.mubr.msk.f32.vlgmr.msra.gmra.mrb[8].mxu0 %vm383_vm1, %v989_v30  ;;  %1761 = vmatprep.subr.bf16.mxu1 %v1760_v32  ;;  %p1956_p12 = scmp.ne.s32.totalorder %s1455_s19, %s1955_s6  ;;  %p1961_p0 = scmp.lt.s32.totalorder %s1955_s6, %s1955_s6 }
 0x57e   :  { %1763 = vmatpush3.bf16.msra.mxu1 %v1760_v32  ;;  %1677 = vmatprep.mubr.msk.f32.mxu1 %vm383_vm1, %v990_v33 }
 0x57f   :  { %v1836_v34 = vpop.eup %1835  ;;  %1767 = vmatpush3.bf16.msra.mxu0 %v1764_v28  ;;  %p1962_p1 = por %p1961_p0, %p1960_p13 }
 0x580   :  { %v991_v35 = vmul.f32 %v1836_v34, %v1828_v12  ;;  %1769 = vmatprep.subr.bf16.mxu0 %v1768_v38 }
 0x581   :  { %p1963_p2 = pnand %p1962_p1, %p1956_p12 }
 0x582   :  { %1678 = vmatmul.mubr.msk.f32.vlgmr.msra.gmra.mrb[16].mxu1 %vm383_vm1, %v991_v35 }
 0x650   :  { %v1672_v39 = vpop.f32.mrb[8].mxu0 }
 0x651   :  { %v1072_v42 = vpop.f32.mrb[9].mxu0 }
 0x652   :  { %1684 = vmatprep.mubr.msk.f32.mxu0 %vm383_vm1, %v1072_v42 }
 0x653   :  { %1685 = vmatmul.mubr.msk.f32.vlgmr.msra.gmra.mrb[10].mxu0 %vm383_vm1, %v1672_v39 }
 0x654   :  { %1771 = vmatpush3.bf16.msra.mxu0 %v1768_v38 }
 0x655   :  { %v1679_v48 = vpop.f32.mrb[16].mxu1 }
 0x656   :  { %v1161_v50 = vpop.f32.mrb[17].mxu1 }
 0x657   :  { %1687 = vmatprep.mubr.msk.f32.mxu0 %vm383_vm1, %v1161_v50 }
 0x658   :  { %1688 = vmatmul.mubr.msk.f32.gmra.mrb[12].mxu0 %vm383_vm1, %v1679_v48 }
 0x659   :  { %1694 = vmatprep.mubr.msk.f32.mxu0 %vm383_vm1, %v2248_v47 }
 0x65c   :  { %1695 = vmatmul.mubr.msk.f32.vlgmr.msra.gmra.mrb[10].mxu0 %vm383_vm1, %v2246_v46 }
 0x65d   :  { %1697 = vmatprep.mubr.msk.f32.mxu0 %vm383_vm1, %v2252_v51 }
 0x660   :  { %1698 = vmatmul.mubr.msk.f32.gmra.mrb[12].mxu0 %vm383_vm1, %v2250_v49 }
 0x72f   :  { %v1696_v52 = vpop.f32.mrb[10].mxu0 }
 0x730   :  { %v1367_v53 = vadd.f32 %v1696_v52, %v2129_v18  ;;  %v1347_v31 = vpop.f32.mrb[11].mxu0 }
 0x731   :  { %v1366_v54 = vadd.f32 %v1347_v31, %v2123_v5 }
 0x732   :  { %v1373_v55 = vsel %vm103_vm0, %v1367_v53, 0.0 }
 0x733   :  { %1374 = vadd.xlane.f32.xlu0 %v1373_v55  ;;  %v1699_v56 = vpop.f32.mrb[12].mxu0  ;;  %v1370_v47 = vsel %vm103_vm0, %v1366_v54, 0.0 }
 0x734   :  { %v1369_v46 = vadd.f32 %v1699_v56, %v2137_v21  ;;  %1371 = vadd.xlane.f32.xlu1 %v1370_v47  ;;  %v1357_v57 = vpop.f32.mrb[13].mxu0 }
 0x735   :  { %v1368_v51 = vadd.f32 %v1357_v57, %v2131_v19 }
 0x736   :  { %v1379_v49 = vsel %vm103_vm0, %v1369_v46, 0.0 }
 0x737   :  { %v1376_v58 = vsel %vm103_vm0, %v1368_v51, 0.0 }
 0x738   :  { %1380 = vadd.xlane.f32.xlu1 %v1379_v49  ;;  %1377 = vadd.xlane.f32.xlu0 %v1376_v58 }
 0x7c0   :  { %v1375_v18 = vpop.xlane.xlu0 %1374 }
 0x7c1   :  { %v1384_v5 = vmul.f32 0.03125, %v1375_v18  ;;  %v1372_v59 = vpop.xlane.xlu1 %1371 }
 0x7c2   :  { %v1383_v60 = vmul.f32 0.03125, %v1372_v59 }
 0x7c3   :  { %v1388_v61 = vsub.f32 %v1367_v53, %v1384_v5 }
 0x7c4   :  { %v1387_v62 = vsub.f32 %v1366_v54, %v1383_v60 }
 0x7c5   :  { %v1381_v63 = vpop.xlane.xlu1 %1380  ;;  %v1378_v0 = vpop.xlane.xlu0 %1377  ;;  %v1392_v1 = vmul.f32 %v1388_v61, %v1388_v61 }
 0x7c6   :  { %v1386_v21 = vmul.f32 0.03125, %v1381_v63  ;;  %v1385_v2 = vmul.f32 0.03125, %v1378_v0  ;;  %v1391_v3 = vmul.f32 %v1387_v62, %v1387_v62 }
 0x7c7   :  { %v1398_v19 = vsel %vm103_vm0, %v1392_v1, 0.0 }
 0x7c8   :  { %v1390_v4 = vsub.f32 %v1369_v46, %v1386_v21  ;;  %v1389_v6 = vsub.f32 %v1368_v51, %v1385_v2  ;;  %1399 = vadd.xlane.f32.xlu1 %v1398_v19  ;;  %v1395_v7 = vsel %vm103_vm0, %v1391_v3, 0.0 }
 0x7c9   :  { %1396 = vadd.xlane.f32.xlu0 %v1395_v7 }
 0x7ca   :  { %v1394_v8 = vmul.f32 %v1390_v4, %v1390_v4  ;;  %v1393_v9 = vmul.f32 %v1389_v6, %v1389_v6 }
 0x7cc   :  { %v1404_v10 = vsel %vm103_vm0, %v1394_v8, 0.0  ;;  %v1401_v11 = vsel %vm103_vm0, %v1393_v9, 0.0 }
 0x7cd   :  { %1405 = vadd.xlane.f32.xlu1 %v1404_v10  ;;  %1402 = vadd.xlane.f32.xlu0 %v1401_v11 }
 0x855   :  { %v1400_v12 = vpop.xlane.xlu1 %1399 }
 0x856   :  { %v1408_v13 = vmul.f32 0.03125, %v1400_v12  ;;  %v1397_v14 = vpop.xlane.xlu0 %1396 }
 0x857   :  { %v1407_v15 = vmul.f32 0.03125, %v1397_v14 }
 0x858   :  { %v1412_v16 = vadd.f32 1e-06, %v1408_v13 }
 0x859   :  { %v1411_v17 = vadd.f32 1e-06, %v1407_v15 }
 0x85a   :  { %1837 = vrsqrt.f32 %v1412_v16  ;;  %v1406_v20 = vpop.xlane.xlu1 %1405  ;;  %v1403_v22 = vpop.xlane.xlu0 %1402 }
 0x85b   :  { %1839 = vrsqrt.f32 %v1411_v17  ;;  %v1410_v23 = vmul.f32 0.03125, %v1406_v20  ;;  %v1409_v24 = vmul.f32 0.03125, %v1403_v22 }
 0x85d   :  { %v1414_v43 = vadd.f32 1e-06, %v1410_v23  ;;  %v1413_v44 = vadd.f32 1e-06, %v1409_v24 }
 0x85f   :  { %1841 = vrsqrt.f32 %v1414_v43 }
 0x860   :  { %1843 = vrsqrt.f32 %v1413_v44 }
 0x864   :  { %v1838_v45 = vpop.eup %1837 }
 0x865   :  { %v1840_v28 = vpop.eup %1839  ;;  %v1420_v40 = vmul.f32 %v1838_v45, %v1388_v61 }
 0x866   :  { %v1419_v41 = vmul.f32 %v1840_v28, %v1387_v62 }
 0x867   :  { %v1431_v27 = vmul.f32 %v1512_v25, %v1420_v40 }
 0x868   :  { %v1430_v29 = vmul.f32 %v1512_v25, %v1419_v41 }
 0x869   :  { %v1842_v30 = vpop.eup %1841  ;;  %v1442_v32 = vadd.f32 %v1513_v26, %v1431_v27 }
 0x86a   :  { %v1844_v33 = vpop.eup %1843  ;;  %v1422_v34 = vmul.f32 %v1842_v30, %v1390_v4  ;;  %v1441_v35 = vadd.f32 %v1513_v26, %v1430_v29 }
 0x86b   :  { %v1421_v36 = vmul.f32 %v1844_v33, %v1389_v6  ;;  %1446 = vst.msk [vmem:[#allocation11 + $0x8] sm:$0xff] %vm103_vm0, %v1442_v32 }
 0x86c   :  { %v1433_v37 = vmul.f32 %v1512_v25, %v1422_v34  ;;  %1445 = vst.msk [vmem:[#allocation11] sm:$0xff] %vm103_vm0, %v1441_v35 }
 0x86d   :  { %v1432_v38 = vmul.f32 %v1512_v25, %v1421_v36 }
 0x86e   :  { %v1444_v39 = vadd.f32 %v1513_v26, %v1433_v37 }
 0x86f   :  { %v1443_v42 = vadd.f32 %v1513_v26, %v1432_v38 }
 0x870   :  { %1448 = vst.msk [vmem:[#allocation11 + $0x18] sm:$0xff] %vm103_vm0, %v1444_v39 }
 0x871   :  { %1447 = vst.msk [vmem:[#allocation11 + $0x10] sm:$0xff] %vm103_vm0, %v1443_v42 }
 0x872   :  { %1966 = shalt.err (!%p1963_p2)
}
 0x873   :  { %s1967_s22 = scalar_lea.hbm %s2330_s7, 512 }
 0x874   :  { %p1968_p3 = scmp.ne.s32.totalorder %s2330_s7, %s1967_s22  ;;  %p1971_p4 = scmp.lt.u32.totalorder %s1967_s22, %s2330_s7 }
 0x876   :  { %p1973_p5 = pnand %p1971_p4, %p1968_p3 }
 0x878   :  { %1976 = shalt.err (!%p1973_p5)
}
 0x879   :  { %1460 = dma.vmem_to_hbm [thread:$0]  %s1455_s19, 512, %s2330_s7, [#allocation4], %s1987_s13, %s1987_s13, %s1988_s14  }
 0x87a   :  { %1983 = dma.done.wait [#allocation4], 512  }
 0x87b   :  { %1984 = vsyncadd [#allocation4], 4294966784 }
 0x87c   :  { %1464 = vsyncpa [#allocation3], 1 }
 0x87d   :  { %1465 = vsyncpa [#allocation6], 1 }
 0x87e   :  { %1466 = vsyncpa [#allocation9], 1 }
 0x87f   :  { %1467 = vsyncpa [#allocation4], 1 }

</bundles_post_ra>
